<compile_context>
chip_gen: v7x
topology: tpu7x:2x2x1
jax: 0.10.0
libtpu: 0.0.40
codegen_flags: <defaults>
</compile_context>

<pallas_src>
import math

import jax
import jax.numpy as jnp
from jax.experimental import pallas as pl
from jax.experimental.pallas import tpu as pltpu


def _round_up(n: int, m: int) -> int:
    return ((n + m - 1) // m) * m


# --------------------------------------------------------------------------
# Kernels
# --------------------------------------------------------------------------
def _mlp_kernel_std(x_ref, w1_ref, b1_ref, w2_ref, b2_ref, o_ref):
    """Standard layout: o_ref is (tb, D_out_p128)."""
    x = x_ref[...].astype(w1_ref.dtype)
    h = jnp.dot(x, w1_ref[...], preferred_element_type=jnp.float32)
    h = h + b1_ref[...]
    h = jnp.where(h > 0.0, h, 0.2 * h)                      # LeakyReLU(0.2), f32 VPU
    o = jnp.dot(h.astype(w2_ref.dtype), w2_ref[...],
                preferred_element_type=jnp.float32)
    o = o + b2_ref[...]
    o_ref[...] = o.astype(o_ref.dtype)


def _mlp_kernel_tout(x_ref, w1_ref, b1_ref, w2t_ref, b2t_ref, o_ref):
    """Transposed-output layout for narrow heads: o_ref is (D_out_p8, tb).

    Batch lands on the 128-lane axis so the store is lane-dense (unmasked vst)
    even for D_out=1; output padding is only 8 sublanes instead of 128 lanes.
    """
    x = x_ref[...].astype(w1_ref.dtype)
    h = jnp.dot(x, w1_ref[...], preferred_element_type=jnp.float32)
    h = h + b1_ref[...]
    h = jnp.where(h > 0.0, h, 0.2 * h)                      # LeakyReLU(0.2), f32 VPU
    # (D_out_p8, H_p) contracted with (tb, H_p) on H  ->  (D_out_p8, tb).
    o = jax.lax.dot_general(
        w2t_ref[...], h.astype(w2t_ref.dtype),
        dimension_numbers=(((1,), (1,)), ((), ())),
        preferred_element_type=jnp.float32)
    o = o + b2t_ref[...]
    o_ref[...] = o.astype(o_ref.dtype)


# --------------------------------------------------------------------------
# Parameter preparation (hoisted out of the forward pass — run once)
# --------------------------------------------------------------------------
def prepare_params(w1, b1, w2, b2, *, use_bf16=False):
    """Pad weights/biases to lane-dense shapes (zero padding => exact) and
    optionally cast the matmul operands to bf16. Done once at init/load time
    so the per-call graph is just the pallas_call plus a tiny slice."""
    D_in, H = w1.shape
    H2, D_out = w2.shape
    assert H2 == H and b1.shape == (H,) and b2.shape == (D_out,)

    w_dtype = jnp.bfloat16 if use_bf16 else jnp.float32
    D_in_p = _round_up(D_in, 128)
    H_p = _round_up(H, 128)
    D_out_p8 = _round_up(D_out, 8)
    transposed_out = D_out_p8 < 128          # narrow head -> transposed output

    w1_p = jnp.zeros((D_in_p, H_p), w_dtype).at[:D_in, :H].set(w1.astype(w_dtype))
    b1_p = jnp.zeros((1, H_p), jnp.float32).at[0, :H].set(b1.astype(jnp.float32))

    if transposed_out:
        out_pad = D_out_p8
        w2_p = jnp.zeros((out_pad, H_p), w_dtype).at[:D_out, :H].set(
            w2.T.astype(w_dtype))
        b2_p = jnp.zeros((out_pad, 1), jnp.float32).at[:D_out, 0].set(
            b2.astype(jnp.float32))
    else:
        out_pad = _round_up(D_out, 128)
        w2_p = jnp.zeros((H_p, out_pad), w_dtype).at[:H, :D_out].set(
            w2.astype(w_dtype))
        b2_p = jnp.zeros((1, out_pad), jnp.float32).at[0, :D_out].set(
            b2.astype(jnp.float32))

    return dict(w1=w1_p, b1=b1_p, w2=w2_p, b2=b2_p,
                dims=(D_in, H, D_out), padded=(D_in_p, H_p, out_pad),
                transposed_out=transposed_out)


# --------------------------------------------------------------------------
# Forward
# --------------------------------------------------------------------------
def _choose_tb(B, D_in_p, x_itemsize):
    """Batch tile: single program for small B; for large B use big
    (128-aligned) tiles while keeping ~>=4 grid steps for the 2 v7x TCs."""
    if B <= 256:
        return B, 1                                   # one program, no padding
    tb = min(1024, _round_up(pl.cdiv(B, 4), 128))
    # Keep the double-buffered x tile modest so everything fits v7x's 64 MiB.
    max_rows = ((8 << 20) // (D_in_p * x_itemsize)) // 128 * 128
    tb = max(128, min(tb, max_rows))
    return tb, pl.cdiv(B, tb)


def classifier_forward(x, params):
    """x: (B, D_in); params from prepare_params(). Returns (B, D_out) in x.dtype."""
    B, D_in = x.shape
    d_in0, H, D_out = params["dims"]
    D_in_p, H_p, out_pad = params["padded"]
    assert D_in == d_in0
    transposed = params["transposed_out"]
    w1_p, b1_p, w2_p, b2_p = params["w1"], params["b1"], params["w2"], params["b2"]

    # Zero-pad ONLY the feature (reduction) axis when unaligned; never copy x
    # just to pad the batch axis — the tail grid block is handled ragged.
    x_p = x if D_in_p == D_in else jnp.pad(x, ((0, 0), (0, D_in_p - D_in)))

    itemsize = jnp.dtype(x.dtype).itemsize
    tb, n_tiles = _choose_tb(B, D_in_p, itemsize)
    grid = (n_tiles,)

    # VMEM budget: double-buffered streaming tiles (x, out), resident params
    # (counted x2 conservatively), f32 intermediate h, plus headroom.
    wbytes = sum(int(a.size) * jnp.dtype(a.dtype).itemsize
                 for a in (w1_p, b1_p, w2_p, b2_p))
    est = (2 * tb * D_in_p * itemsize          # x tiles
           + 2 * tb * out_pad * itemsize       # out tiles
           + 2 * wbytes                        # resident weights/biases
           + tb * H_p * 6)                     # h (f32) + bf16 copy headroom
    vmem_limit = int(min(48 << 20, max(20 << 20, est + (4 << 20))))

    compiler_params = pltpu.CompilerParams(
        dimension_semantics=("parallel",),     # batch tiles shard across TCs
        vmem_limit_bytes=vmem_limit,
    )

    if transposed:
        out_p = pl.pallas_call(
            _mlp_kernel_tout,
            out_shape=jax.ShapeDtypeStruct((out_pad, B), x.dtype),
            grid_spec=pltpu.PrefetchScalarGridSpec(
                num_scalar_prefetch=0,
                grid=grid,
                in_specs=[
                    pl.BlockSpec((tb, D_in_p), lambda i: (i, 0)),    # x tile
                    pl.BlockSpec((D_in_p, H_p), lambda i: (0, 0)),   # w1 (resident)
                    pl.BlockSpec((1, H_p), lambda i: (0, 0)),        # b1
                    pl.BlockSpec((out_pad, H_p), lambda i: (0, 0)),  # w2^T (resident)
                    pl.BlockSpec((out_pad, 1), lambda i: (0, 0)),    # b2^T
                ],
                out_specs=pl.BlockSpec((out_pad, tb), lambda i: (0, i)),
            ),
            compiler_params=compiler_params,
        )(x_p, w1_p, b1_p, w2_p, b2_p)
        # (D_out_p8, B) -> (B, D_out); slice re-reads only 8 x B values.
        return out_p[:D_out, :].T

    out_p = pl.pallas_call(
        _mlp_kernel_std,
        out_shape=jax.ShapeDtypeStruct((B, out_pad), x.dtype),
        grid_spec=pltpu.PrefetchScalarGridSpec(
            num_scalar_prefetch=0,
            grid=grid,
            in_specs=[
                pl.BlockSpec((tb, D_in_p), lambda i: (i, 0)),
                pl.BlockSpec((D_in_p, H_p), lambda i: (0, 0)),
                pl.BlockSpec((1, H_p), lambda i: (0, 0)),
                pl.BlockSpec((H_p, out_pad), lambda i: (0, 0)),
                pl.BlockSpec((1, out_pad), lambda i: (0, 0)),
            ],
            out_specs=pl.BlockSpec((tb, out_pad), lambda i: (i, 0)),
        ),
        compiler_params=compiler_params,
    )(x_p, w1_p, b1_p, w2_p, b2_p)
    return out_p[:, :D_out]


# --------------------------------------------------------------------------
# Init + reference (for the self-test)
# --------------------------------------------------------------------------
def init_params(key, input_dim, hidden_dim, output_dim):
    """kaiming_normal_(a=0, mode='fan_in') for weights (std = sqrt(2/fan_in));
    biases keep the PyTorch Linear default U(-1/sqrt(fan_in), 1/sqrt(fan_in))."""
    k1, k2, k3, k4 = jax.random.split(key, 4)
    std1 = math.sqrt(2.0 / input_dim)
    std2 = math.sqrt(2.0 / hidden_dim)
    w1 = jax.random.normal(k1, (input_dim, hidden_dim), jnp.float32) * std1
    w2 = jax.random.normal(k2, (hidden_dim, output_dim), jnp.float32) * std2
    bb1 = 1.0 / math.sqrt(input_dim)
    bb2 = 1.0 / math.sqrt(hidden_dim)
    b1 = jax.random.uniform(k3, (hidden_dim,), jnp.float32, -bb1, bb1)
    b2 = jax.random.uniform(k4, (output_dim,), jnp.float32, -bb2, bb2)
    return w1, b1, w2, b2


def _reference(x, w1, b1, w2, b2, use_bf16):
    """Plain-JAX reference matching the kernel's numerics."""
    if use_bf16:
        xd, w1d, w2d = (x.astype(jnp.bfloat16), w1.astype(jnp.bfloat16),
                        w2.astype(jnp.bfloat16))
    else:
        xd, w1d, w2d = x, w1, w2
    h = jnp.dot(xd, w1d, preferred_element_type=jnp.float32) + b1
    h = jnp.where(h > 0, h, 0.2 * h)
    o = jnp.dot(h.astype(w2d.dtype), w2d, preferred_element_type=jnp.float32) + b2
    return o.astype(x.dtype)


if __name__ == "__main__":
    # Small shapes consistent with the module defaults (scaled down):
    # input_dim=512 -> 128, hidden_dim=256 -> 64, output_dim=1.
    B, D_in, H, D_out = 16, 128, 64, 1

    key = jax.random.PRNGKey(0)
    kx, kp, kx2 = jax.random.split(key, 3)
    x = jax.random.normal(kx, (B, D_in), jnp.float32)
    w1, b1, w2, b2 = init_params(kp, D_in, H, D_out)

    # Default f32 path — matches the original PyTorch module numerics.
    params_f32 = prepare_params(w1, b1, w2, b2, use_bf16=False)
    out_f32 = jax.block_until_ready(classifier_forward(x, params_f32))
    ref_f32 = _reference(x, w1, b1, w2, b2, use_bf16=False)
    assert out_f32.shape == (B, D_out)
    assert jnp.allclose(out_f32, ref_f32, atol=1e-4, rtol=1e-4)

    # Opt-in bf16 MXU fast path (checked against a numerics-matched reference).
    params_bf16 = prepare_params(w1, b1, w2, b2, use_bf16=True)
    out_bf16 = jax.block_until_ready(classifier_forward(x, params_bf16))
    ref_bf16 = _reference(x, w1, b1, w2, b2, use_bf16=True)
    assert out_bf16.shape == (B, D_out)
    assert jnp.allclose(out_bf16, ref_bf16, atol=2e-3, rtol=2e-3)

    # Ragged multi-tile batch (grid of 3, partial tail block, no x zero-pad copy).
    B2 = 300
    x2 = jax.random.normal(kx2, (B2, D_in), jnp.float32)
    out2 = jax.block_until_ready(classifier_forward(x2, params_f32))
    ref2 = _reference(x2, w1, b1, w2, b2, use_bf16=False)
    assert out2.shape == (B2, D_out)
    assert jnp.allclose(out2, ref2, atol=1e-4, rtol=1e-4)

    print("KERNEL_OK")
</pallas_src>

<mosaic_0001>
module attributes {stable_mosaic.version = 11 : i64} {
  func.func @_mlp_kernel_tout(%arg0: i32, %arg1: memref<16x128xf32, #tpu.memory_space<vmem>>, %arg2: memref<128x128xf32, #tpu.memory_space<vmem>>, %arg3: memref<1x128xf32, #tpu.memory_space<vmem>>, %arg4: memref<8x128xf32, #tpu.memory_space<vmem>>, %arg5: memref<8x1xf32, #tpu.memory_space<vmem>>, %arg6: memref<8x16xf32, #tpu.memory_space<vmem>>) attributes {dimension_semantics = [#tpu.dimension_semantics<parallel>], iteration_bounds = array<i64: 1>, scalar_prefetch = 0 : i64, scratch_operands = 0 : i64, tpu.core_type = #tpu.core_type<tc>, window_params = [{transform_indices = @transform_0, window_bounds = array<i64: 16, 128>}, {pipeline_mode = #tpu.pipeline_mode<synchronous>, transform_indices = @transform_1, window_bounds = array<i64: 128, 128>}, {pipeline_mode = #tpu.pipeline_mode<synchronous>, transform_indices = @transform_2, window_bounds = array<i64: 1, 128>}, {pipeline_mode = #tpu.pipeline_mode<synchronous>, transform_indices = @transform_3, window_bounds = array<i64: 8, 128>}, {pipeline_mode = #tpu.pipeline_mode<synchronous>, transform_indices = @transform_4, window_bounds = array<i64: 8, 1>}, {transform_indices = @transform_5, window_bounds = array<i64: 8, 16>}]} {
    %c0 = arith.constant 0 : index
    %c0_0 = arith.constant 0 : index
    %0 = vector.load %arg1[%c0, %c0_0] : memref<16x128xf32, #tpu.memory_space<vmem>>, vector<16x128xf32>
    %c0_1 = arith.constant 0 : index
    %c0_2 = arith.constant 0 : index
    %1 = vector.load %arg2[%c0_1, %c0_2] : memref<128x128xf32, #tpu.memory_space<vmem>>, vector<128x128xf32>
    %cst = arith.constant dense<0.000000e+00> : vector<16x128xf32>
    %2 = tpu.matmul %0, %1, %cst {dimension_numbers = #tpu.dot_dimension_numbers<[1], [0], [0], [1], [0, 0, 1, 1], [], []>} : vector<16x128xf32>, vector<128x128xf32>, vector<16x128xf32> -> vector<16x128xf32>
    %c0_3 = arith.constant 0 : index
    %c0_4 = arith.constant 0 : index
    %3 = vector.load %arg3[%c0_3, %c0_4] : memref<1x128xf32, #tpu.memory_space<vmem>>, vector<1x128xf32>
    %4 = vector.broadcast %3 : vector<1x128xf32> to vector<16x128xf32>
    %5 = arith.addf %2, %4 : vector<16x128xf32>
    %cst_5 = arith.constant 0.000000e+00 : f32
    %6 = vector.broadcast %cst_5 : f32 to vector<16x128xf32>
    %7 = arith.cmpf ogt, %5, %6 : vector<16x128xf32>
    %cst_6 = arith.constant 2.000000e-01 : f32
    %8 = vector.broadcast %cst_6 : f32 to vector<16x128xf32>
    %9 = arith.mulf %8, %5 : vector<16x128xf32>
    %10 = arith.select %7, %5, %9 : vector<16x128xi1>, vector<16x128xf32>
    %c0_7 = arith.constant 0 : index
    %c0_8 = arith.constant 0 : index
    %11 = vector.load %arg4[%c0_7, %c0_8] : memref<8x128xf32, #tpu.memory_space<vmem>>, vector<8x128xf32>
    %cst_9 = arith.constant dense<0.000000e+00> : vector<8x16xf32>
    %12 = tpu.matmul %11, %10, %cst_9 {dimension_numbers = #tpu.dot_dimension_numbers<[1], [1], [0], [0], [0, 0, 1, 0], [], []>} : vector<8x128xf32>, vector<16x128xf32>, vector<8x16xf32> -> vector<8x16xf32>
    %c0_10 = arith.constant 0 : index
    %c0_11 = arith.constant 0 : index
    %13 = vector.load %arg5[%c0_10, %c0_11] : memref<8x1xf32, #tpu.memory_space<vmem>>, vector<8x1xf32>
    %14 = vector.broadcast %13 : vector<8x1xf32> to vector<8x16xf32>
    %15 = arith.addf %12, %14 : vector<8x16xf32>
    %c0_12 = arith.constant 0 : index
    %c0_13 = arith.constant 0 : index
    %16 = vector.load %arg6[%c0_12, %c0_13] : memref<8x16xf32, #tpu.memory_space<vmem>>, vector<8x16xf32>
    tpu.vector_store %arg6[%c0_12, %c0_13], %15 {strides = array<i32>} : memref<8x16xf32, #tpu.memory_space<vmem>>, vector<8x16xf32>,
    return
  }
  func.func @transform_0(%arg0: i32) -> (i32, i32) {
    %c0_i32 = arith.constant 0 : i32
    %c0_i32_0 = arith.constant 0 : i32
    return %arg0, %c0_i32 : i32, i32
  }
  func.func @transform_1(%arg0: i32) -> (i32, i32) {
    %c0_i32 = arith.constant 0 : i32
    %c0_i32_0 = arith.constant 0 : i32
    %c0_i32_1 = arith.constant 0 : i32
    return %c0_i32, %c0_i32_0 : i32, i32
  }
  func.func @transform_2(%arg0: i32) -> (i32, i32) {
    %c0_i32 = arith.constant 0 : i32
    %c0_i32_0 = arith.constant 0 : i32
    %c0_i32_1 = arith.constant 0 : i32
    return %c0_i32, %c0_i32_0 : i32, i32
  }
  func.func @transform_3(%arg0: i32) -> (i32, i32) {
    %c0_i32 = arith.constant 0 : i32
    %c0_i32_0 = arith.constant 0 : i32
    %c0_i32_1 = arith.constant 0 : i32
    return %c0_i32, %c0_i32_0 : i32, i32
  }
  func.func @transform_4(%arg0: i32) -> (i32, i32) {
    %c0_i32 = arith.constant 0 : i32
    %c0_i32_0 = arith.constant 0 : i32
    %c0_i32_1 = arith.constant 0 : i32
    return %c0_i32, %c0_i32_0 : i32, i32
  }
  func.func @transform_5(%arg0: i32) -> (i32, i32) {
    %c0_i32 = arith.constant 0 : i32
    %c0_i32_0 = arith.constant 0 : i32
    return %c0_i32, %arg0 : i32, i32
  }
}

</mosaic_0001>

<bundles_post_ra>
// kernel: tpu_custom_call.1
= control target key start
LH: loop header
LB: loop body
LE: loop exit
PB: predicated region body
PF: predicated region fallthrough
CT: control target
= control target key end

     0   :  { %10 = vsyncpa [#allocation3], 0  ;;  %s515_s0 = inlined_call_operand.hbm [shape: f32[16,128], index: 0, kind: input, shape index: {}]   ;;  %s516_s1 = inlined_call_operand.hbm [shape: f32[128,128], index: 1, kind: input, shape index: {}]   ;;  %s517_s2 = inlined_call_operand.vmem [shape: f32[1,128], index: 2, kind: input, shape index: {}]   ;;  %s518_s3 = inlined_call_operand.vmem [shape: f32[8,128], index: 3, kind: input, shape index: {}]   ;;  %s519_s4 = inlined_call_operand.vmem [shape: f32[8,1], index: 4, kind: input, shape index: {}]   ;;  %s520_s5 = inlined_call_operand.hbm [shape: f32[8,16], index: 5, kind: output, shape index: {}]  }
   0x1   :  { %11 = vsyncpa [#allocation6], 0 }
   0x2   :  { %12 = vsyncpa [#allocation4], 0  ;;  %s431_s18 = smov [#allocation2]   ;;  %s359_s22 = scalar_lea.hbm %s515_s0, 256 }
   0x3   :  { %s18_s19 = sshll.u32 %s431_s18, 4  ;;  %p360_p0 = scmp.ne.s32.totalorder %s515_s0, %s359_s22  ;;  %s19_s19 = int_to_ptr.vmem [resolvable:$true] %s18_s19 }
   0x4   :  { %p363_p1 = scmp.lt.u32.totalorder %s359_s22, %s515_s0 }
   0x6   :  { %p365_p2 = pnand %p363_p1, %p360_p0 }
   0x8   :  { %368 = shalt.err (!%p365_p2)
}
   0x9   :  { %s369_s27 = scalar_lea.vmem %s19_s19, 256  ;;  %p374_p4 = scmp.lt.s32.totalorder %s19_s19, %s19_s19 }
   0xa   :  { %p370_p3 = scmp.ne.s32.totalorder %s19_s19, %s369_s27  ;;  %p375_p5 = scmp.lt.s32.totalorder %s369_s27, %s369_s27 }
   0xc   :  { %p376_p6 = por %p375_p5, %p374_p4 }
   0xe   :  { %p377_p7 = pnand %p376_p6, %p370_p3 }
  0x10   :  { %380 = shalt.err (!%p377_p7)
}
  0x11   :  { %s432_s28 = smov 128   ;;  %s433_s29 = smov 8  }
  0x12   :  { %24 = dma.hbm_to_vmem [thread:$0]  %s515_s0, 256, %s19_s19, [#allocation3], %s432_s28, %s432_s28, %s433_s29  }
  0x13   :  { %s434_s7 = smov [#allocation5]   ;;  %s381_s11 = scalar_lea.hbm %s516_s1, 2048 }
  0x14   :  { %s30_s8 = sshll.u32 %s434_s7, 4  ;;  %p382_p8 = scmp.ne.s32.totalorder %s516_s1, %s381_s11  ;;  %s31_s8 = int_to_ptr.vmem [resolvable:$true] %s30_s8 }
  0x15   :  { %p385_p9 = scmp.lt.u32.totalorder %s381_s11, %s516_s1 }
  0x17   :  { %p387_p10 = pnand %p385_p9, %p382_p8 }
  0x19   :  { %390 = shalt.err (!%p387_p10)
}
  0x1a   :  { %s391_s16 = scalar_lea.vmem %s31_s8, 2048  ;;  %p396_p12 = scmp.lt.s32.totalorder %s31_s8, %s31_s8 }
  0x1b   :  { %p392_p11 = scmp.ne.s32.totalorder %s31_s8, %s391_s16  ;;  %p397_p13 = scmp.lt.s32.totalorder %s391_s16, %s391_s16 }
  0x1d   :  { %p398_p0 = por %p397_p13, %p396_p12 }
  0x1f   :  { %p399_p1 = pnand %p398_p0, %p392_p11 }
  0x21   :  { %402 = shalt.err (!%p399_p1)
}
  0x22   :  { %36 = dma.hbm_to_vmem [thread:$0]  %s516_s1, 2048, %s31_s8, [#allocation6], %s432_s28, %s432_s28, %s433_s29  }
  0x23   :  { %425 = dma.done.wait [#allocation3], 256  }
  0x24   :  { %426 = vsyncadd [#allocation3], 4294967040 }
  0x25   :  { %427 = dma.done.wait [#allocation6], 2048  }
  0x26   :  { %428 = vsyncadd [#allocation6], 4294965248  ;;  %v51_v0 = vld [vmem:[#allocation5] sm:$0xff]  ;;  %v52_v1 = vld [vmem:[#allocation5 + $0x8] sm:$0xff]  ;;  %v435_v26 = vmov 0.0|0.0   ;;  %vm436_vm0 = vmmov 0  }
  0x27   :  { %v53_v2 = vld [vmem:[#allocation5 + $0x10] sm:$0xff]  ;;  %v314_v3 = vpack.c.bf16 %v52_v1, %v51_v0  ;;  %v54_v4 = vld [vmem:[#allocation5 + $0x18] sm:$0xff]  ;;  %v55_v6 = vld [vmem:[#allocation5 + $0x20] sm:$0xff]  ;;  %346 = vmatprep.subr.bf16.mxu1 %v435_v26  ;;  %v437_v27 = vmov 0.0   ;;  %v438_v29 = vmov 0   ;;  %s439_s22 = smov [#allocation7]  }
  0x28   :  { %v318_v5 = vpack.c.bf16 %v54_v4, %v53_v2  ;;  %v56_v7 = vld [vmem:[#allocation5 + $0x28] sm:$0xff]  ;;  %v49_v9 = vld [vmem:[#allocation2] sm:$0xff]  ;;  %v58_v11 = vld [vmem:[#allocation5 + $0x38] sm:$0xff]  ;;  %311 = vmatprep.mubr.msk.f32.mxu1 %vm436_vm0, %v437_v27  ;;  %358 = vset.pattern.permute.xlu0 %v438_v29  ;;  %vm232_vm3 = vcmask 130048  }
  0x29   :  { %315 = vmatprep.subr.bf16.mxu0 %v314_v3  ;;  %v322_v8 = vpack.c.bf16 %v56_v7, %v55_v6  ;;  %v57_v10 = vld [vmem:[#allocation5 + $0x30] sm:$0xff]  ;;  %304 = vmatprep.mubr.f32.mxu0 %v49_v9  ;;  %v59_v13 = vld [vmem:[#allocation5 + $0x40] sm:$0xff]  ;;  %v60_v14 = vld [vmem:[#allocation5 + $0x48] sm:$0xff] }
  0x2a   :  { %317 = vmatpush3.bf16.msra.mxu0 %v314_v3  ;;  %v326_v12 = vpack.c.bf16 %v58_v11, %v57_v10  ;;  %v330_v15 = vpack.c.bf16 %v60_v14, %v59_v13  ;;  %v61_v16 = vld [vmem:[#allocation5 + $0x50] sm:$0xff]  ;;  %v62_v17 = vld [vmem:[#allocation5 + $0x58] sm:$0xff]  ;;  %v63_v19 = vld [vmem:[#allocation5 + $0x60] sm:$0xff] }
  0x2b   :  { %319 = vmatprep.subr.bf16.mxu0 %v318_v5  ;;  %v334_v18 = vpack.c.bf16 %v62_v17, %v61_v16  ;;  %v64_v20 = vld [vmem:[#allocation5 + $0x68] sm:$0xff]  ;;  %v65_v22 = vld [vmem:[#allocation5 + $0x70] sm:$0xff]  ;;  %v66_v23 = vld [vmem:[#allocation5 + $0x78] sm:$0xff] }
  0x2c   :  { %v338_v21 = vpack.c.bf16 %v64_v20, %v63_v19  ;;  %v342_v24 = vpack.c.bf16 %v66_v23, %v65_v22  ;;  %v50_v25 = vld [vmem:[#allocation2 + $0x8] sm:$0xff]  ;;  %v156_v28 = vld [vmem:[%s519_s4] sm:$0xff] }
  0x2d   :  { %159 = vperm.xlu0 %358, %v156_v28   ;;  %v250_v30 = vld [vmem:[%s517_s2] ss:$0 sm:$0xff]  ;;  %s240_s2 = sshll.u32 %s439_s22, 4  ;;  %s241_s2 = int_to_ptr.vmem [resolvable:$true] %s240_s2 }
  0x2e   :  { %321 = vmatpush3.bf16.msra.mxu0 %v318_v5  ;;  %v155_v40 = vld [vmem:[%s518_s3] sm:$0xff]  ;;  %s403_s23 = scalar_lea.vmem %s241_s2, 128  ;;  %p408_p3 = scmp.lt.s32.totalorder %s241_s2, %s241_s2 }
  0x2f   :  { %323 = vmatprep.subr.bf16.mxu0 %v322_v8  ;;  %p404_p2 = scmp.ne.s32.totalorder %s241_s2, %s403_s23  ;;  %p409_p4 = scmp.lt.s32.totalorder %s403_s23, %s403_s23 }
  0x31   :  { %p410_p5 = por %p409_p4, %p408_p3 }
  0x32   :  { %325 = vmatpush3.bf16.msra.mxu0 %v322_v8 }
  0x33   :  { %327 = vmatprep.subr.bf16.mxu0 %v326_v12  ;;  %p411_p6 = pnand %p410_p5, %p404_p2 }
  0x36   :  { %329 = vmatpush3.bf16.msra.mxu0 %v326_v12 }
  0x37   :  { %331 = vmatprep.subr.bf16.mxu0 %v330_v15 }
  0x3a   :  { %333 = vmatpush3.bf16.msra.mxu0 %v330_v15 }
  0x3b   :  { %335 = vmatprep.subr.bf16.mxu0 %v334_v18 }
  0x3e   :  { %337 = vmatpush3.bf16.msra.mxu0 %v334_v18 }
  0x3f   :  { %339 = vmatprep.subr.bf16.mxu0 %v338_v21 }
  0x42   :  { %341 = vmatpush3.bf16.msra.mxu0 %v338_v21 }
  0x43   :  { %343 = vmatprep.subr.bf16.mxu0 %v342_v24 }
  0x46   :  { %345 = vmatpush3.bf16.msra.mxu0 %v342_v24 }
  0x49   :  { %305 = vmatmul.mubr.f32.vlgmr.msra.gmra.mrb[0].mxu0 %v50_v25 }
  0xac   :  { %v160_v41 = vpop.permute.xlu0 %159 }
 0x11c   :  { %v306_v31 = vpop.f32.mrb[0].mxu0 }
 0x11d   :  { %v146_v32 = vadd.f32 %v306_v31, %v250_v30  ;;  %v140_v33 = vpop.f32.mrb[1].mxu0 }
 0x11e   :  { %v141_v34 = vadd.f32 %v250_v30, %v140_v33 }
 0x11f   :  { %v152_v35 = vmul.f32 0.2, %v146_v32  ;;  %vm150_vm1 = vcmp.gt.f32.partialorder %v146_v32, 0.0 }
 0x120   :  { %v151_v36 = vmul.f32 0.2, %v141_v34  ;;  %vm149_vm2 = vcmp.gt.f32.partialorder %v141_v34, 0.0 }
 0x121   :  { %v154_v37 = vsel %vm150_vm1, %v146_v32, %v152_v35 }
 0x122   :  { %v153_v38 = vsel %vm149_vm2, %v141_v34, %v151_v36 }
 0x123   :  { %v347_v39 = vpack.c.bf16 %v154_v37, %v153_v38 }
 0x125   :  { %348 = vmatpush3.bf16.xpose.msra.mxu1 %v347_v39 }
 0x12c   :  { %312 = vmatmul.mubr.f32.vlgmr.msra.gmra.mrb[0].mxu1 %v155_v40 }
 0x1ff   :  { %v228_v42 = vpop.f32.mrb[0].mxu1 }
 0x200   :  { %v229_v43 = vadd.f32 %v228_v42, %v160_v41  ;;  %v313_v44 = vpop.f32.mrb[1].mxu1 }
 0x202   :  { %233 = vst.msk [vmem:[#allocation7] sm:$0xff] %vm232_vm3, %v229_v43 }
 0x203   :  { %414 = shalt.err (!%p411_p6)
}
 0x204   :  { %s415_s3 = scalar_lea.hbm %s520_s5, 128 }
 0x205   :  { %p416_p7 = scmp.ne.s32.totalorder %s520_s5, %s415_s3  ;;  %p419_p8 = scmp.lt.u32.totalorder %s415_s3, %s520_s5 }
 0x207   :  { %p421_p9 = pnand %p419_p8, %p416_p7 }
 0x209   :  { %424 = shalt.err (!%p421_p9)
}
 0x20a   :  { %243 = dma.vmem_to_hbm [thread:$0]  %s241_s2, 128, %s520_s5, [#allocation4]  }
 0x20b   :  { %429 = dma.done.wait [#allocation4], 128  }
 0x20c   :  { %430 = vsyncadd [#allocation4], 4294967168 }
 0x20d   :  { %247 = vsyncpa [#allocation3], 1 }
 0x20e   :  { %248 = vsyncpa [#allocation6], 1 }
 0x20f   :  { %249 = vsyncpa [#allocation4], 1 }

</bundles_post_ra>
